<compile_context>
chip_gen: v7x
topology: tpu7x:2x2x1
jax: 0.10.0
libtpu: 0.0.40
codegen_flags: <defaults>
</compile_context>

<pallas_src>
import functools

import jax
import jax.numpy as jnp
from jax import lax
from jax.experimental import pallas as pl
from jax.experimental.pallas import tpu as pltpu


def _pick_exp_dtype():
    """bf16 exp only on chips with a bf16 EUP (v6e / v7x); f32 elsewhere (v5e and older)."""
    try:
        kind = jax.devices()[0].device_kind.lower()
    except Exception:
        return jnp.float32
    return jnp.bfloat16 if ("v6" in kind or "v7" in kind) else jnp.float32


def _attention_kernel(x_ref, wq_ref, wk_ref, wv_ref, wout_ref, bias_ref, o_ref,
                      k_sc, v_sc, *, tq, exp_dtype):
    # x_ref:    (1, C, N)        bf16  -- full spatial extent for this batch element
    # wq_ref:   (heads, d, C)    bf16  -- Q weights (softmax scale pre-folded)
    # wk_ref:   (heads, d, C)    bf16
    # wv_ref:   (heads, d, C)    bf16
    # wout_ref: (heads, d, C)    bf16  -- output 1x1-conv weight, C on the lane axis
    # bias_ref: (C, 1)           f32
    # o_ref:    (1, C, tq)       f32   -- accumulated across the heads grid axis
    # k_sc/v_sc:(heads, d, N)    bf16  -- per-head K/V cache (filled once per batch)
    qi = pl.program_id(1)
    hi = pl.program_id(2)

    # --- K/V channel projection: once per (batch, head) -----------------------------
    @pl.when(qi == 0)
    def _():
        xf = x_ref[0]                                                        # (C, N)
        k_sc[hi] = jnp.dot(wk_ref[hi], xf,
                           preferred_element_type=jnp.float32).astype(jnp.bfloat16)
        v_sc[hi] = jnp.dot(wv_ref[hi], xf,
                           preferred_element_type=jnp.float32).astype(jnp.bfloat16)

    # --- Q projection for this q-tile (sliced from the resident x block) ------------
    start = pl.multiple_of(qi * tq, tq)
    xq = x_ref[0, :, pl.ds(start, tq)]                                       # (C, tq)
    q = jnp.dot(wq_ref[hi], xq,
                preferred_element_type=jnp.float32).astype(jnp.bfloat16)     # (d, tq)

    k = k_sc[hi]                                                             # (d, N)
    v = v_sc[hi]                                                             # (d, N)

    # sim[i, j] = sum_d q[d, i] * k[d, j]   (no transpose materialized)
    sim = lax.dot_general(q, k, (((0,), (0,)), ((), ())),
                          preferred_element_type=jnp.float32)                # (tq, N) f32
    sim = sim - jnp.max(sim, axis=-1, keepdims=True)
    p = jnp.exp(sim.astype(exp_dtype))                                       # EUP
    inv = pl.reciprocal(
        jnp.sum(p, axis=-1, keepdims=True, dtype=jnp.float32), approx=True)  # (tq, 1) f32

    # PV with unnormalized probs; normalize the small (tq, d) result afterwards.
    out = lax.dot_general(p.astype(jnp.bfloat16), v, (((1,), (1,)), ((), ())),
                          preferred_element_type=jnp.float32)                # (tq, d) f32
    out = out * inv                                                          # (tq,1) bcast

    # This head's slice of the output 1x1 conv: y[c, i] = sum_d wout[d, c] * out[i, d]
    y = lax.dot_general(wout_ref[hi], out.astype(jnp.bfloat16),
                        (((0,), (1,)), ((), ())),
                        preferred_element_type=jnp.float32)                  # (C, tq)

    @pl.when(hi == 0)
    def _():
        o_ref[0] = bias_ref[...] + y        # bias (C,1) broadcasts over lanes

    @pl.when(hi > 0)
    def _():
        o_ref[0] = o_ref[0] + y


@functools.partial(jax.jit, static_argnames=("heads", "dim_head"))
def attention_forward(x_nchw, w_qkv, w_out, b_out, *, heads, dim_head):
    """x_nchw: (B, C, H, W) f32; w_qkv: (3*hidden, C, 1, 1); w_out: (C, hidden, 1, 1); b_out: (C,)."""
    b, c, H, W = x_nchw.shape
    n = H * W
    scale = float(dim_head) ** -0.5

    # Lane-aligned q-tile size; keeps per-step score matrix at O(tq * N).
    if n % 256 == 0 and n >= 1024:
        tq = 256
    elif n % 128 == 0 and n > 128:
        tq = 128
    else:
        # TODO(synk): N not a multiple of 128 falls back to a single full-N q-tile.
        tq = n
    n_q = n // tq

    # NCHW -> (B, C, N): pure reshape (channels-first), no HBM transpose.
    x_flat = x_nchw.reshape(b, c, n).astype(jnp.bfloat16)

    # (3*hidden, C, 1, 1) -> (3, heads, d, C); fold softmax scale into the Q rows.
    wqkv = w_qkv.reshape(3, heads, dim_head, c).astype(jnp.float32)
    wq_h = (wqkv[0] * scale).astype(jnp.bfloat16)                     # (heads, d, C)
    wk_h = wqkv[1].astype(jnp.bfloat16)                               # (heads, d, C)
    wv_h = wqkv[2].astype(jnp.bfloat16)                               # (heads, d, C)

    # to_out weight (C, hidden, 1, 1) -> (heads, d, C): C on the lane axis (lane-dense).
    wout_h = jnp.transpose(w_out.reshape(c, heads, dim_head), (1, 2, 0)).astype(jnp.bfloat16)
    bias = b_out.reshape(c, 1).astype(jnp.float32)                    # (C, 1)

    exp_dtype = _pick_exp_dtype()
    kernel = functools.partial(_attention_kernel, tq=tq, exp_dtype=exp_dtype)

    out_flat = pl.pallas_call(
        kernel,
        out_shape=jax.ShapeDtypeStruct((b, c, n), jnp.float32),
        grid_spec=pltpu.PrefetchScalarGridSpec(
            num_scalar_prefetch=0,
            grid=(b, n_q, heads),
            in_specs=[
                # Full spatial extent; block index changes only at batch boundaries.
                pl.BlockSpec((1, c, n), lambda bi, qi, hi: (bi, 0, 0)),
                # Hoisted weights: constant index_map -> one DMA, indexed by hi in-kernel.
                pl.BlockSpec((heads, dim_head, c), lambda bi, qi, hi: (0, 0, 0)),
                pl.BlockSpec((heads, dim_head, c), lambda bi, qi, hi: (0, 0, 0)),
                pl.BlockSpec((heads, dim_head, c), lambda bi, qi, hi: (0, 0, 0)),
                pl.BlockSpec((heads, dim_head, c), lambda bi, qi, hi: (0, 0, 0)),
                pl.BlockSpec((c, 1), lambda bi, qi, hi: (0, 0)),
            ],
            out_specs=pl.BlockSpec((1, c, tq), lambda bi, qi, hi: (bi, 0, qi)),
            scratch_shapes=[
                pltpu.VMEM((heads, dim_head, n), jnp.bfloat16),   # K cache
                pltpu.VMEM((heads, dim_head, n), jnp.bfloat16),   # V cache
            ],
        ),
        compiler_params=pltpu.CompilerParams(
            # qi must be "arbitrary": K/V scratch is filled at qi==0 and reused by qi>0;
            # heads must be "arbitrary": output block accumulates across it.
            dimension_semantics=("parallel", "arbitrary", "arbitrary"),
        ),
    )(x_flat, wq_h, wk_h, wv_h, wout_h, bias)

    # (B, C, N) -> NCHW is a free reshape (no transpose).
    return out_flat.reshape(b, c, H, W)


def attention_reference(x, w_qkv, w_out, b_out, *, heads, dim_head):
    """Pure-JAX (f32) replica of the PyTorch forward pass (NCHW)."""
    b, c, H, W = x.shape
    hidden = heads * dim_head
    scale = float(dim_head) ** -0.5

    qkv = jnp.einsum("oc,bchw->bohw", w_qkv.reshape(3 * hidden, c), x)
    q, k, v = jnp.split(qkv, 3, axis=1)

    def rearr(t):  # 'b (h c) x y -> b h c (x y)'
        return t.reshape(b, heads, dim_head, H * W)

    q, k, v = map(rearr, (q, k, v))
    q = q * scale
    sim = jnp.einsum("bhdi,bhdj->bhij", q, k)
    sim = sim - jnp.max(sim, axis=-1, keepdims=True)
    attn = jax.nn.softmax(sim, axis=-1)
    out = jnp.einsum("bhij,bhdj->bhid", attn, v)                     # (b, h, n, d)
    out = jnp.transpose(out, (0, 1, 3, 2)).reshape(b, hidden, H, W)  # 'b h (x y) d -> b (h d) x y'
    y = jnp.einsum("oc,bchw->bohw", w_out.reshape(c, hidden), out)
    return y + b_out[None, :, None, None]


if __name__ == "__main__":
    B, C, H, W = 2, 4, 16, 16
    HEADS, DIM_HEAD = 4, 32
    HIDDEN = HEADS * DIM_HEAD

    key = jax.random.PRNGKey(0)
    kx, kq, kw, kb = jax.random.split(key, 4)

    x = jax.random.normal(kx, (B, C, H, W), dtype=jnp.float32)
    # Deterministic parameter init (conv-weight shapes from the module's __init__).
    w_qkv = 0.1 * jax.random.normal(kq, (3 * HIDDEN, C, 1, 1), dtype=jnp.float32)   # to_qkv (no bias)
    w_out = 0.1 * jax.random.normal(kw, (C, HIDDEN, 1, 1), dtype=jnp.float32)       # to_out weight
    b_out = 0.1 * jax.random.normal(kb, (C,), dtype=jnp.float32)                    # to_out bias

    y_kernel = attention_forward(x, w_qkv, w_out, b_out, heads=HEADS, dim_head=DIM_HEAD)
    y_kernel = jax.block_until_ready(y_kernel)

    y_ref = attention_reference(x, w_qkv, w_out, b_out, heads=HEADS, dim_head=DIM_HEAD)

    assert y_kernel.shape == (B, C, H, W)
    # bf16 MXU operands + (bf16 exp on v6e/v7x) + approx reciprocal -> looser tolerance.
    assert jnp.allclose(y_kernel, y_ref, atol=2e-2, rtol=2e-2), (
        float(jnp.max(jnp.abs(y_kernel - y_ref)))
    )
    print("KERNEL_OK")
</pallas_src>

<mosaic_0001>
module attributes {stable_mosaic.version = 11 : i64} {
  func.func @_attention_kernel(%arg0: i32, %arg1: i32, %arg2: i32, %arg3: memref<1x4x256xbf16, #tpu.memory_space<vmem>>, %arg4: memref<4x32x4xbf16, #tpu.memory_space<vmem>>, %arg5: memref<4x32x4xbf16, #tpu.memory_space<vmem>>, %arg6: memref<4x32x4xbf16, #tpu.memory_space<vmem>>, %arg7: memref<4x32x4xbf16, #tpu.memory_space<vmem>>, %arg8: memref<4x1xf32, #tpu.memory_space<vmem>>, %arg9: memref<1x4x128xf32, #tpu.memory_space<vmem>>, %arg10: memref<4x32x256xbf16, #tpu.memory_space<vmem>>, %arg11: memref<4x32x256xbf16, #tpu.memory_space<vmem>>) attributes {dimension_semantics = [#tpu.dimension_semantics<parallel>, #tpu.dimension_semantics<arbitrary>, #tpu.dimension_semantics<arbitrary>], iteration_bounds = array<i64: 2, 2, 4>, scalar_prefetch = 0 : i64, scratch_operands = 2 : i64, tpu.core_type = #tpu.core_type<tc>, window_params = [{transform_indices = @transform_0, window_bounds = array<i64: 1, 4, 256>}, {pipeline_mode = #tpu.pipeline_mode<synchronous>, transform_indices = @transform_1, window_bounds = array<i64: 4, 32, 4>}, {pipeline_mode = #tpu.pipeline_mode<synchronous>, transform_indices = @transform_2, window_bounds = array<i64: 4, 32, 4>}, {pipeline_mode = #tpu.pipeline_mode<synchronous>, transform_indices = @transform_3, window_bounds = array<i64: 4, 32, 4>}, {pipeline_mode = #tpu.pipeline_mode<synchronous>, transform_indices = @transform_4, window_bounds = array<i64: 4, 32, 4>}, {pipeline_mode = #tpu.pipeline_mode<synchronous>, transform_indices = @transform_5, window_bounds = array<i64: 4, 1>}, {transform_indices = @transform_6, window_bounds = array<i64: 1, 4, 128>}]} {
    %c0_i32 = arith.constant 0 : i32
    %0 = arith.cmpi eq, %arg1, %c0_i32 : i32
    %1 = arith.extui %0 : i1 to i32
    %c0_i32_0 = arith.constant 0 : i32
    %2 = arith.cmpi ne, %1, %c0_i32_0 : i32
    scf.if %2 {
      %c0_19 = arith.constant 0 : index
      %c0_20 = arith.constant 0 : index
      %c0_21 = arith.constant 0 : index
      %43 = vector.load %arg3[%c0_19, %c0_20, %c0_21] : memref<1x4x256xbf16, #tpu.memory_space<vmem>>, vector<1x4x256xbf16>
      %44 = vector.shape_cast %43 : vector<1x4x256xbf16> to vector<4x256xbf16>
      %45 = arith.index_cast %arg2 : i32 to index
      %c0_22 = arith.constant 0 : index
      %c0_23 = arith.constant 0 : index
      %46 = vector.load %arg5[%45, %c0_22, %c0_23] : memref<4x32x4xbf16, #tpu.memory_space<vmem>>, vector<1x32x4xbf16>
      %47 = vector.shape_cast %46 : vector<1x32x4xbf16> to vector<32x4xbf16>
      %cst_24 = arith.constant dense<0.000000e+00> : vector<32x256xf32>
      %48 = tpu.matmul %47, %44, %cst_24 {dimension_numbers = #tpu.dot_dimension_numbers<[1], [0], [0], [1], [0, 0, 1, 1], [], []>} : vector<32x4xbf16>, vector<4x256xbf16>, vector<32x256xf32> -> vector<32x256xf32>
      %49 = arith.truncf %48 : vector<32x256xf32> to vector<32x256xbf16>
      %50 = arith.index_cast %arg2 : i32 to index
      %c0_25 = arith.constant 0 : index
      %c0_26 = arith.constant 0 : index
      %51 = vector.load %arg10[%50, %c0_25, %c0_26] : memref<4x32x256xbf16, #tpu.memory_space<vmem>>, vector<1x32x256xbf16>
      %52 = vector.shape_cast %51 : vector<1x32x256xbf16> to vector<32x256xbf16>
      %53 = vector.shape_cast %49 : vector<32x256xbf16> to vector<1x32x256xbf16>
      tpu.vector_store %arg10[%50, %c0_25, %c0_26], %53 {strides = array<i32>} : memref<4x32x256xbf16, #tpu.memory_space<vmem>>, vector<1x32x256xbf16>,
      %54 = arith.index_cast %arg2 : i32 to index
      %c0_27 = arith.constant 0 : index
      %c0_28 = arith.constant 0 : index
      %55 = vector.load %arg6[%54, %c0_27, %c0_28] : memref<4x32x4xbf16, #tpu.memory_space<vmem>>, vector<1x32x4xbf16>
      %56 = vector.shape_cast %55 : vector<1x32x4xbf16> to vector<32x4xbf16>
      %cst_29 = arith.constant dense<0.000000e+00> : vector<32x256xf32>
      %57 = tpu.matmul %56, %44, %cst_29 {dimension_numbers = #tpu.dot_dimension_numbers<[1], [0], [0], [1], [0, 0, 1, 1], [], []>} : vector<32x4xbf16>, vector<4x256xbf16>, vector<32x256xf32> -> vector<32x256xf32>
      %58 = arith.truncf %57 : vector<32x256xf32> to vector<32x256xbf16>
      %59 = arith.index_cast %arg2 : i32 to index
      %c0_30 = arith.constant 0 : index
      %c0_31 = arith.constant 0 : index
      %60 = vector.load %arg11[%59, %c0_30, %c0_31] : memref<4x32x256xbf16, #tpu.memory_space<vmem>>, vector<1x32x256xbf16>
      %61 = vector.shape_cast %60 : vector<1x32x256xbf16> to vector<32x256xbf16>
      %62 = vector.shape_cast %58 : vector<32x256xbf16> to vector<1x32x256xbf16>
      tpu.vector_store %arg11[%59, %c0_30, %c0_31], %62 {strides = array<i32>} : memref<4x32x256xbf16, #tpu.memory_space<vmem>>, vector<1x32x256xbf16>,
    } else {
    }
    %c128_i32 = arith.constant 128 : i32
    %3 = arith.muli %arg1, %c128_i32 : i32
    %4 = tpu.assume_multiple %3, 128 : i32
    %c0 = arith.constant 0 : index
    %c0_1 = arith.constant 0 : index
    %5 = arith.index_cast %4 : i32 to index
    %6 = vector.load %arg3[%c0, %c0_1, %5] : memref<1x4x256xbf16, #tpu.memory_space<vmem>>, vector<1x4x128xbf16>
    %7 = vector.shape_cast %6 : vector<1x4x128xbf16> to vector<4x128xbf16>
    %8 = arith.index_cast %arg2 : i32 to index
    %c0_2 = arith.constant 0 : index
    %c0_3 = arith.constant 0 : index
    %9 = vector.load %arg4[%8, %c0_2, %c0_3] : memref<4x32x4xbf16, #tpu.memory_space<vmem>>, vector<1x32x4xbf16>
    %10 = vector.shape_cast %9 : vector<1x32x4xbf16> to vector<32x4xbf16>
    %cst = arith.constant dense<0.000000e+00> : vector<32x128xf32>
    %11 = tpu.matmul %10, %7, %cst {dimension_numbers = #tpu.dot_dimension_numbers<[1], [0], [0], [1], [0, 0, 1, 1], [], []>} : vector<32x4xbf16>, vector<4x128xbf16>, vector<32x128xf32> -> vector<32x128xf32>
    %12 = arith.truncf %11 : vector<32x128xf32> to vector<32x128xbf16>
    %13 = arith.index_cast %arg2 : i32 to index
    %c0_4 = arith.constant 0 : index
    %c0_5 = arith.constant 0 : index
    %14 = vector.load %arg10[%13, %c0_4, %c0_5] : memref<4x32x256xbf16, #tpu.memory_space<vmem>>, vector<1x32x256xbf16>
    %15 = vector.shape_cast %14 : vector<1x32x256xbf16> to vector<32x256xbf16>
    %16 = arith.index_cast %arg2 : i32 to index
    %c0_6 = arith.constant 0 : index
    %c0_7 = arith.constant 0 : index
    %17 = vector.load %arg11[%16, %c0_6, %c0_7] : memref<4x32x256xbf16, #tpu.memory_space<vmem>>, vector<1x32x256xbf16>
    %18 = vector.shape_cast %17 : vector<1x32x256xbf16> to vector<32x256xbf16>
    %cst_8 = arith.constant dense<0.000000e+00> : vector<128x256xf32>
    %19 = tpu.matmul %12, %15, %cst_8 {dimension_numbers = #tpu.dot_dimension_numbers<[0], [0], [1], [1], [0, 1, 1, 1], [], []>} : vector<32x128xbf16>, vector<32x256xbf16>, vector<128x256xf32> -> vector<128x256xf32>
    %cst_9 = arith.constant dense<0xFF800000> : vector<128xf32>
    %20 = vector.multi_reduction <maximumf>, %19, %cst_9 [1] : vector<128x256xf32> to vector<128xf32>
    %21 = vector.shape_cast %20 : vector<128xf32> to vector<128x1xf32>
    %22 = vector.broadcast %21 : vector<128x1xf32> to vector<128x256xf32>
    %23 = arith.subf %19, %22 : vector<128x256xf32>
    %24 = math.exp %23 : vector<128x256xf32>
    %cst_10 = arith.constant dense<0.000000e+00> : vector<128xf32>
    %25 = vector.multi_reduction <add>, %24, %cst_10 [1] : vector<128x256xf32> to vector<128xf32>
    %26 = vector.shape_cast %25 : vector<128xf32> to vector<128x1xf32>
    %27 = tpu.reciprocal %26 {approx = true} : vector<128x1xf32> -> vector<128x1xf32>
    %28 = arith.truncf %24 : vector<128x256xf32> to vector<128x256xbf16>
    %cst_11 = arith.constant dense<0.000000e+00> : vector<128x32xf32>
    %29 = tpu.matmul %28, %18, %cst_11 {dimension_numbers = #tpu.dot_dimension_numbers<[1], [1], [0], [0], [0, 0, 1, 0], [], []>} : vector<128x256xbf16>, vector<32x256xbf16>, vector<128x32xf32> -> vector<128x32xf32>
    %30 = vector.broadcast %27 : vector<128x1xf32> to vector<128x32xf32>
    %31 = arith.mulf %29, %30 : vector<128x32xf32>
    %32 = arith.index_cast %arg2 : i32 to index
    %c0_12 = arith.constant 0 : index
    %c0_13 = arith.constant 0 : index
    %33 = vector.load %arg7[%32, %c0_12, %c0_13] : memref<4x32x4xbf16, #tpu.memory_space<vmem>>, vector<1x32x4xbf16>
    %34 = vector.shape_cast %33 : vector<1x32x4xbf16> to vector<32x4xbf16>
    %35 = arith.truncf %31 : vector<128x32xf32> to vector<128x32xbf16>
    %cst_14 = arith.constant dense<0.000000e+00> : vector<4x128xf32>
    %36 = tpu.matmul %34, %35, %cst_14 {dimension_numbers = #tpu.dot_dimension_numbers<[0], [1], [1], [0], [0, 1, 1, 0], [], []>} : vector<32x4xbf16>, vector<128x32xbf16>, vector<4x128xf32> -> vector<4x128xf32>
    %c0_i32_15 = arith.constant 0 : i32
    %37 = arith.cmpi eq, %arg2, %c0_i32_15 : i32
    %38 = arith.extui %37 : i1 to i32
    %c0_i32_16 = arith.constant 0 : i32
    %39 = arith.cmpi ne, %38, %c0_i32_16 : i32
    scf.if %39 {
      %c0_19 = arith.constant 0 : index
      %c0_20 = arith.constant 0 : index
      %43 = vector.load %arg8[%c0_19, %c0_20] : memref<4x1xf32, #tpu.memory_space<vmem>>, vector<4x1xf32>
      %44 = vector.broadcast %43 : vector<4x1xf32> to vector<4x128xf32>
      %45 = arith.addf %44, %36 : vector<4x128xf32>
      %c0_21 = arith.constant 0 : index
      %c0_22 = arith.constant 0 : index
      %c0_23 = arith.constant 0 : index
      %46 = vector.load %arg9[%c0_21, %c0_22, %c0_23] : memref<1x4x128xf32, #tpu.memory_space<vmem>>, vector<1x4x128xf32>
      %47 = vector.shape_cast %46 : vector<1x4x128xf32> to vector<4x128xf32>
      %48 = vector.shape_cast %45 : vector<4x128xf32> to vector<1x4x128xf32>
      tpu.vector_store %arg9[%c0_21, %c0_22, %c0_23], %48 {strides = array<i32>} : memref<1x4x128xf32, #tpu.memory_space<vmem>>, vector<1x4x128xf32>,
    } else {
    }
    %c0_i32_17 = arith.constant 0 : i32
    %40 = arith.cmpi sgt, %arg2, %c0_i32_17 : i32
    %41 = arith.extui %40 : i1 to i32
    %c0_i32_18 = arith.constant 0 : i32
    %42 = arith.cmpi ne, %41, %c0_i32_18 : i32
    scf.if %42 {
      %c0_19 = arith.constant 0 : index
      %c0_20 = arith.constant 0 : index
      %c0_21 = arith.constant 0 : index
      %43 = vector.load %arg9[%c0_19, %c0_20, %c0_21] : memref<1x4x128xf32, #tpu.memory_space<vmem>>, vector<1x4x128xf32>
      %44 = vector.shape_cast %43 : vector<1x4x128xf32> to vector<4x128xf32>
      %45 = arith.addf %44, %36 : vector<4x128xf32>
      %c0_22 = arith.constant 0 : index
      %c0_23 = arith.constant 0 : index
      %c0_24 = arith.constant 0 : index
      %46 = vector.load %arg9[%c0_22, %c0_23, %c0_24] : memref<1x4x128xf32, #tpu.memory_space<vmem>>, vector<1x4x128xf32>
      %47 = vector.shape_cast %46 : vector<1x4x128xf32> to vector<4x128xf32>
      %48 = vector.shape_cast %45 : vector<4x128xf32> to vector<1x4x128xf32>
      tpu.vector_store %arg9[%c0_22, %c0_23, %c0_24], %48 {strides = array<i32>} : memref<1x4x128xf32, #tpu.memory_space<vmem>>, vector<1x4x128xf32>,
    } else {
    }
    return
  }
  func.func @transform_0(%arg0: i32, %arg1: i32, %arg2: i32) -> (i32, i32, i32) {
    %c0_i32 = arith.constant 0 : i32
    %c0_i32_0 = arith.constant 0 : i32
    %c0_i32_1 = arith.constant 0 : i32
    return %arg0, %c0_i32, %c0_i32_0 : i32, i32, i32
  }
  func.func @transform_1(%arg0: i32, %arg1: i32, %arg2: i32) -> (i32, i32, i32) {
    %c0_i32 = arith.constant 0 : i32
    %c0_i32_0 = arith.constant 0 : i32
    %c0_i32_1 = arith.constant 0 : i32
    %c0_i32_2 = arith.constant 0 : i32
    return %c0_i32, %c0_i32_0, %c0_i32_1 : i32, i32, i32
  }
  func.func @transform_2(%arg0: i32, %arg1: i32, %arg2: i32) -> (i32, i32, i32) {
    %c0_i32 = arith.constant 0 : i32
    %c0_i32_0 = arith.constant 0 : i32
    %c0_i32_1 = arith.constant 0 : i32
    %c0_i32_2 = arith.constant 0 : i32
    return %c0_i32, %c0_i32_0, %c0_i32_1 : i32, i32, i32
  }
  func.func @transform_3(%arg0: i32, %arg1: i32, %arg2: i32) -> (i32, i32, i32) {
    %c0_i32 = arith.constant 0 : i32
    %c0_i32_0 = arith.constant 0 : i32
    %c0_i32_1 = arith.constant 0 : i32
    %c0_i32_2 = arith.constant 0 : i32
    return %c0_i32, %c0_i32_0, %c0_i32_1 : i32, i32, i32
  }
  func.func @transform_4(%arg0: i32, %arg1: i32, %arg2: i32) -> (i32, i32, i32) {
    %c0_i32 = arith.constant 0 : i32
    %c0_i32_0 = arith.constant 0 : i32
    %c0_i32_1 = arith.constant 0 : i32
    %c0_i32_2 = arith.constant 0 : i32
    return %c0_i32, %c0_i32_0, %c0_i32_1 : i32, i32, i32
  }
  func.func @transform_5(%arg0: i32, %arg1: i32, %arg2: i32) -> (i32, i32) {
    %c0_i32 = arith.constant 0 : i32
    %c0_i32_0 = arith.constant 0 : i32
    %c0_i32_1 = arith.constant 0 : i32
    return %c0_i32, %c0_i32_0 : i32, i32
  }
  func.func @transform_6(%arg0: i32, %arg1: i32, %arg2: i32) -> (i32, i32, i32) {
    %c0_i32 = arith.constant 0 : i32
    %c0_i32_0 = arith.constant 0 : i32
    return %arg0, %c0_i32, %arg1 : i32, i32, i32
  }
}

</mosaic_0001>

<bundles_post_ra>
// kernel: attention_forward.1
= control target key start
LH: loop header
LB: loop body
LE: loop exit
PB: predicated region body
PF: predicated region fallthrough
CT: control target
= control target key end

     0   :  { %s1655_s21 = smov 0   ;;  %s1657_s22 = smov 0   ;;  %s1924_s0 = inlined_call_operand.vmem [shape: bf16[2,4,256], index: 0, kind: input, shape index: {}]   ;;  %s1925_s1 = inlined_call_operand.vmem [shape: bf16[4,32,4], index: 1, kind: input, shape index: {}]   ;;  %s1926_s2 = inlined_call_operand.vmem [shape: bf16[4,32,4], index: 2, kind: input, shape index: {}]   ;;  %s1927_s3 = inlined_call_operand.vmem [shape: bf16[4,32,4], index: 3, kind: input, shape index: {}]   ;;  %s1928_s4 = inlined_call_operand.vmem [shape: bf16[4,32,4], index: 4, kind: input, shape index: {}]   ;;  %s1929_s5 = inlined_call_operand.vmem [shape: f32[4,1], index: 5, kind: input, shape index: {}]   ;;  %s1930_s6 = inlined_call_operand.vmem [shape: f32[2,4,256], index: 6, kind: output, shape index: {}]  }
   0x1   :  { %s1659_s23 = smov 0   ;;  %s1661_s24 = smov 0  }
   0x2   :  { %s1663_s25 = smov 0   ;;  %s1665_s26 = smov 0  }
   0x3   :  { %s1667_s27 = smov 0  }
   0x4 LB: > { %s28_s28 = sadd.s32 1, %s1601_s24  ;;  %s31_s29 = sadd.s32 1, %s1605_s25  ;;  %s1613_s27 = sphi %s1667_s27, %s16_s27   ;;  %s1609_s26 = sphi %s1665_s26, %s1936_s26   ;;  %s1605_s25 = sphi %s1663_s25, %s1935_s25   ;;  %s1601_s24 = sphi %s1661_s24, %s1934_s24   ;;  %s1597_s23 = sphi %s1659_s23, %s1933_s23   ;;  %s1593_s22 = sphi %s1657_s22, %s1932_s22   ;;  %s1589_s21 = sphi %s1655_s21, %s1931_s21  }
   0x5   : > { %p29_p0 = scmp.ge.s32.totalorder %s28_s28, 4  ;;  %p1297_p1 = scmp.ge.s32.totalorder %s1613_s27, 1 }
   0x6   : > { %p233_p2 = scmp.lt.s32.totalorder %s1613_s27, 17  ;;  %s35_s30 = sadd.s32 1, %s1609_s26 }
   0x7   : > { %s1938_s28 = smov (%p29_p0, %s28_s28), 0  ;;  %s1940_s29 = smov (!%p29_p0, %s31_s29), %s1605_s25 }
   0x8   : > { %p234_p3 = pnand %p1297_p1, %p233_p2  ;;  %p33_p4 = scmp.ge.s32.totalorder %s1940_s29, 2 }
   0x9   : > { %p266_p6 = scmp.lt.s32.totalorder (!%p234_p3), %s1597_s23, 1  ;;  %p273_p7 = scmp.lt.s32.totalorder (!%p234_p3), %s1593_s22, 1 }
   0xa   : > { %s1942_s29 = smov (%p33_p4, %s1940_s29), 0  ;;  %s1944_s30 = smov (!%p33_p4, %s35_s30), %s1609_s26 }
   0xb   : > { %p37_p5 = scmp.ge.s32.totalorder %s1944_s30, 2  ;;  %237 = sbr.rel (%p234_p3) target bundleno = 1472 (0x5c0), region = 44 }
   0xc   : > { %p1302_p8 = scmp.ne.s32.totalorder (!%p234_p3), %s1593_s22, 0 }
   0xd   : > { %s1946_s30 = smov (%p37_p5, %s1944_s30), 0 }
  0x12   : > { %s1948_s23 = smov (!%p266_p6, %s1597_s23), 1  ;;  %283 = sbr.rel (%p1302_p8) target bundleno = 255 (0xff), region = 48 }
  0x13   : > { %s274_s7 = scalar_select %p273_p7, %s1593_s22, 1 }
  0x14   : > { %s1345_s8 = sshll.u32 %s1948_s23, 2  ;;  %s1300_s9 = sshll.u32 %s1948_s23, 1  ;;  %vm318_vm0 = vcmask (!%p1302_p8), 1041408   ;;  %v1615_v3 = vmov (!%p1302_p8), 0   ;;  %vm311_vm1 = vcmask (!%p1302_p8), 31744  }
  0x15   : > { %s1706_s12 = scalar_lea.vmem %s1924_s0, %s1345_s8  ;;  %s276_s13 = sadd.s32 %s1300_s9, %s274_s7  ;;  %357 = vmatprep.mubr.bf16.mxu0 (!%p1302_p8), %v1615_v3  ;;  %442 = vmatprep.mubr.bf16.mxu1 (!%p1302_p8), %v1615_v3 }
  0x16   : > { %s1301_s14 = sshll.u32 %s276_s13, 2  ;;  %v1307_v0 = vld.sshfl [vmem:[%s1706_s12] sm:$0x33 pattern:$0x76325410] (!%p1302_p8)  ;;  %s1346_s18 = sshll.u32 (!%p1302_p8), %s1589_s21, 4 }
  0x17   : > { %s1711_s17 = scalar_lea.vmem %s1930_s6, %s1301_s14  ;;  %v310_v1 = vcombine.high (!%p1302_p8), %v1307_v0, %v1307_v0  ;;  %v320_v2 = vsel (!%p1302_p8), %vm318_vm0, %v1307_v0, 0  ;;  %s287_s23 = scalar_lea.vmem (!%p1302_p8), %s1926_s2, %s1346_s18 }
  0x18   : > { %s389_s9 = scalar_lea.vmem (!%p1302_p8), %s1927_s3, %s1346_s18  ;;  %v1454_v4 = vld [vmem:[%s287_s23] sm:$0xff] (!%p1302_p8)   ;;  %v1456_v6 = vld [vmem:[%s287_s23 + $0x8] sm:$0xff] (!%p1302_p8)   ;;  %s1347_s10 = sshll.u32 (!%p1302_p8), %s1589_s21, 5 }
  0x19   : > { %1308 = vmatprep.subr.msk.bf16.mxu0 %vm318_vm0, %v310_v1  ;;  %1315 = vmatprep.subr.msk.bf16.mxu1 %vm318_vm0, %v310_v1  ;;  %v1455_v5 = vld [vmem:[%s389_s9] sm:$0xff]   ;;  %v1457_v7 = vld [vmem:[%s389_s9 + $0x8] sm:$0xff]   ;;  %s383_s11 = scalar_lea.vmem [#allocation2], %s1347_s10  ;;  %s468_s13 = scalar_lea.vmem [#allocation3], %s1347_s10 }
  0x1a   : > { %326 = vmatpush1.bf16.msra.mxu0 %v320_v2  ;;  %411 = vmatpush1.bf16.msra.mxu1 %v320_v2 }
  0x1d   : > { %1309 = vmatmul.mubr.msk.bf16.vlgmr.msra.gmra.mrb[0].mxu0 %vm311_vm1, %v1454_v4  ;;  %1316 = vmatmul.mubr.msk.bf16.vlgmr.msra.gmra.mrb[0].mxu1 %vm311_vm1, %v1455_v5 }
  0x1e   : > { %367 = vmatprep.mubr.bf16.mxu0 %v1615_v3  ;;  %452 = vmatprep.mubr.bf16.mxu1 %v1615_v3 }
  0x25   : > { %1310 = vmatmul.mubr.msk.bf16.gmra.mrb[4].mxu0 %vm311_vm1, %v1456_v6  ;;  %1317 = vmatmul.mubr.msk.bf16.gmra.mrb[4].mxu1 %vm311_vm1, %v1457_v7 }
  0xf0   : > { %v359_v8 = vpop.f32.mrb[0].mxu0  ;;  %v444_v9 = vpop.f32.mrb[0].mxu1 }
  0xf1   : > { %v361_v10 = vpop.f32.mrb[1].mxu0  ;;  %v446_v11 = vpop.f32.mrb[1].mxu1 }
  0xf2   : > { %v363_v12 = vpop.f32.mrb[2].mxu0  ;;  %v448_v13 = vpop.f32.mrb[2].mxu1 }
  0xf3   : > { %v378_v14 = vpack.c.bf16 %v363_v12, %v359_v8  ;;  %v463_v15 = vpack.c.bf16 %v448_v13, %v444_v9  ;;  %v365_v16 = vpop.f32.mrb[3].mxu0  ;;  %v450_v17 = vpop.f32.mrb[3].mxu1 }
  0xf4   : > { %v379_v18 = vpack.c.bf16 %v365_v16, %v361_v10  ;;  %v464_v19 = vpack.c.bf16 %v450_v17, %v446_v11 }
  0xf5   : > { %384 = vst [vmem:[%s383_s11] sm:$0xff] %v378_v14  ;;  %469 = vst [vmem:[%s468_s13] sm:$0xff] %v463_v15 }
  0xf6   : > { %385 = vst [vmem:[%s383_s11 + $0x8] sm:$0xff] %v379_v18  ;;  %470 = vst [vmem:[%s468_s13 + $0x8] sm:$0xff] %v464_v19 }
  0xf8   : > { %v369_v20 = vpop.f32.mrb[4].mxu0  ;;  %v454_v21 = vpop.f32.mrb[4].mxu1 }
  0xf9   : > { %v371_v22 = vpop.f32.mrb[5].mxu0  ;;  %v456_v23 = vpop.f32.mrb[5].mxu1 }
  0xfa   : > { %v373_v24 = vpop.f32.mrb[6].mxu0  ;;  %v458_v25 = vpop.f32.mrb[6].mxu1 }
  0xfb   : > { %v380_v26 = vpack.c.bf16 %v373_v24, %v369_v20  ;;  %v465_v27 = vpack.c.bf16 %v458_v25, %v454_v21  ;;  %v375_v28 = vpop.f32.mrb[7].mxu0  ;;  %v460_v29 = vpop.f32.mrb[7].mxu1 }
  0xfc   : > { %v381_v30 = vpack.c.bf16 %v375_v28, %v371_v22  ;;  %v466_v31 = vpack.c.bf16 %v460_v29, %v456_v23 }
  0xfd   : > { %386 = vst [vmem:[%s383_s11 + $0x10] sm:$0xff] %v380_v26  ;;  %471 = vst [vmem:[%s468_s13 + $0x10] sm:$0xff] %v465_v27 }
  0xfe   : > { %387 = vst [vmem:[%s383_s11 + $0x18] sm:$0xff] %v381_v30  ;;  %472 = vst [vmem:[%s468_s13 + $0x18] sm:$0xff] %v466_v31 }
  0xff PF: > { %s1319_s14 = sshll.u32 %s1593_s22, 7  ;;  %s1350_s15 = sshll.u32 %s1589_s21, 4  ;;  %vm503_vm2 = vcmask 1041408   ;;  %vm496_vm3 = vcmask 31744   ;;  %v1616_v36 = vmov 0   ;;  %vm586_vm4 = vcmask 261120  }
 0x100   : > { %s474_s16 = sshra.s32 %s1319_s14, 7  ;;  %s481_s20 = scalar_lea.vmem %s1925_s1, %s1350_s15  ;;  %643 = vmatprep.mubr.bf16.mxu1 %v1616_v36  ;;  %vm1618_vm5 = vmmov 0  }
 0x101   : > { %s1320_s23 = sshll.u32 %s474_s16, 1  ;;  %v1458_v32 = vld [vmem:[%s481_s20] sm:$0xff]   ;;  %v1459_v35 = vld [vmem:[%s481_s20 + $0x8] sm:$0xff]   ;;  %s1351_s22 = sshll.u32 %s1589_s21, 5 }
 0x102   : > { %s477_s7 = scalar_lea.vmem %s1706_s12, %s1320_s23  ;;  %1368 = vmatprep.mubr.msk.bf16.mxu0 %vm496_vm3, %v1458_v32  ;;  %s559_s8 = scalar_lea.vmem [#allocation2], %s1351_s22 }
 0x103   : > { %v478_v33 = vld [vmem:[%s477_s7] sm:$0x3]  ;;  %s565_s12 = scalar_lea.vmem [#allocation3], %s1351_s22  ;;  %s1062_s11 = scalar_lea.vmem %s1928_s4, %s1350_s15 }
 0x104   : > { %1392 = vmatprep.subr.msk.bf16.mxu0 %vm503_vm2, %v478_v33  ;;  %v505_v34 = vsel %vm503_vm2, %v478_v33, 0  ;;  %p1341_p9 = scmp.ne.s32.totalorder %s1589_s21, 0 }
 0x105   : > { %1367 = vmatpush3.bf16.msra.mxu0 %v505_v34  ;;  %v561_v37 = vld [vmem:[%s559_s8 + $0x8] sm:$0xff]  ;;  %v560_v38 = vld [vmem:[%s559_s8] sm:$0xff]  ;;  %v563_v39 = vld [vmem:[%s559_s8 + $0x18] sm:$0xff] }
 0x106   : > { %611 = vmatprep.subr.bf16.mxu1 %v561_v37  ;;  %v562_v40 = vld [vmem:[%s559_s8 + $0x10] sm:$0xff]  ;;  %v567_v10 = vld [vmem:[%s565_s12 + $0x8] sm:$0xff]  ;;  %v566_v12 = vld [vmem:[%s565_s12] sm:$0xff] }
 0x107   : > { %612 = vmatpush1.bf16.msra.mxu1 %v560_v38  ;;  %948 = vmatprep.subr.bf16.mxu0 %v567_v10  ;;  %v569_v18 = vld [vmem:[%s565_s12 + $0x18] sm:$0xff]  ;;  %v568_v20 = vld [vmem:[%s565_s12 + $0x10] sm:$0xff] }
 0x108   : > { %1369 = vmatmul.mubr.msk.bf16.vlgmr.msra.gmra.mrb[0].mxu0 %vm496_vm3, %v1459_v35  ;;  %613 = vmatprep.subr.bf16.mxu1 %v563_v39 }
 0x10b   : > { %614 = vmatpush1.bf16.msra.mxu1 %v562_v40 }
 0x10e   : > { %949 = vmatpush1.bf16.xpose.msra.mxu0 %v566_v12 }
 0x10f   : > { %950 = vmatprep.subr.bf16.mxu0 %v569_v18 }
 0x116   : > { %951 = vmatpush1.bf16.xpose.msra.mxu0 %v568_v20 }
 0x1db   : > { %v1370_v41 = vpop.f32.mrb[0].mxu0 }
 0x1dc   : > { %v541_v42 = vpop.f32.mrb[1].mxu0 }
 0x1dd   : > { %v1371_v43 = vpop.f32.mrb[2].mxu0 }
 0x1de   : > { %v557_v44 = vpack.c.bf16 %v1371_v43, %v1370_v41  ;;  %v544_v45 = vpop.f32.mrb[3].mxu0 }
 0x1df   : > { %v556_v46 = vpack.c.bf16 %v544_v45, %v541_v42 }
 0x1e1   : > { %570 = vxpose.xlu0.c.b16.start [1/2] (short) %v556_v46, 128 }
 0x1e5   : > { %571 = vxpose.xlu0.c.b16.end [2/2] (short) %v557_v44, 128 }
 0x247   : > { %v578_v47 = vpop.trf.xlu0 }
 0x248   : > { %1329 = vmatmul.mubr.msk.bf16.vlgmr.msra.gmra.mrb[0].mxu1 %vm586_vm4, %v578_v47 }
 0x249   : > { %653 = vmatprep.mubr.bf16.mxu1 %v1616_v36 }
 0x24b   : > { %v579_v48 = vpop.trf.xlu0 }
 0x24f   : > { %v580_v49 = vpop.trf.xlu0 }
 0x250   : > { %1330 = vmatmul.mubr.msk.bf16.gmra.mrb[4].mxu1 %vm586_vm4, %v579_v48 }
 0x251   : > { %663 = vmatprep.mubr.bf16.mxu1 %v1616_v36 }
 0x253   : > { %v581_v50 = vpop.trf.xlu0 }
 0x257   : > { %v582_v51 = vpop.trf.xlu0 }
 0x258   : > { %1331 = vmatmul.mubr.msk.bf16.gmra.mrb[8].mxu1 %vm586_vm4, %v580_v49 }
 0x259   : > { %673 = vmatprep.mubr.bf16.mxu1 %v1616_v36 }
 0x25b   : > { %v583_v52 = vpop.trf.xlu0 }
 0x25f   : > { %v584_v53 = vpop.trf.xlu0 }
 0x260   : > { %1332 = vmatmul.mubr.msk.bf16.gmra.mrb[12].mxu1 %vm586_vm4, %v581_v50 }
 0x261   : > { %683 = vmatprep.mubr.bf16.mxu1 %v1616_v36 }
 0x263   : > { %v585_v54 = vpop.trf.xlu0 }
 0x268   : > { %1333 = vmatmul.mubr.msk.bf16.gmra.mrb[16].mxu1 %vm586_vm4, %v582_v51 }
 0x269   : > { %693 = vmatprep.mubr.bf16.mxu1 %v1616_v36 }
 0x270   : > { %1334 = vmatmul.mubr.msk.bf16.gmra.mrb[20].mxu1 %vm586_vm4, %v583_v52 }
 0x271   : > { %703 = vmatprep.mubr.bf16.mxu1 %v1616_v36 }
 0x278   : > { %1335 = vmatmul.mubr.msk.bf16.gmra.mrb[24].mxu1 %vm586_vm4, %v584_v53 }
 0x279   : > { %713 = vmatprep.mubr.bf16.mxu1 %v1616_v36 }
 0x280   : > { %1336 = vmatmul.mubr.msk.bf16.gmra.mrb[28].mxu1 %vm586_vm4, %v585_v54 }
 0x31b   : > { %v1742_v55 = vpop.f32.mrb[0].mxu1 }
 0x31c   : > { %v1744_v56 = vpop.f32.mrb[1].mxu1 }
 0x31d   : > { %v1746_v57 = vpop.f32.mrb[2].mxu1  ;;  %v724_v58 = vmax.f32 %v1742_v55, %v1744_v56 }
 0x31e   : > { %v1750_v59 = vpop.f32.mrb[3].mxu1 }
 0x31f   : > { %725 = vmax.xlane.f32.xlu1 %v724_v58  ;;  %v727_v60 = vmax.f32 %v1746_v57, %v1750_v59 }
 0x323   : > { %728 = vmax.xlane.f32.xlu1 %v727_v60  ;;  %v1754_v61 = vpop.f32.mrb[4].mxu1 }
 0x324   : > { %v1756_v62 = vpop.f32.mrb[5].mxu1 }
 0x325   : > { %v1758_v63 = vpop.f32.mrb[6].mxu1  ;;  %v730_v0 = vmax.f32 %v1754_v61, %v1756_v62 }
 0x326   : > { %v1762_v1 = vpop.f32.mrb[7].mxu1 }
 0x327   : > { %731 = vmax.xlane.f32.xlu0 %v730_v0  ;;  %v733_v2 = vmax.f32 %v1758_v63, %v1762_v1 }
 0x329   : > { %734 = vmax.xlane.f32.xlu1 %v733_v2 }
 0x32b   : > { %v1766_v3 = vpop.f32.mrb[8].mxu1 }
 0x32c   : > { %v1768_v4 = vpop.f32.mrb[9].mxu1 }
 0x32d   : > { %v1770_v5 = vpop.f32.mrb[10].mxu1  ;;  %v736_v6 = vmax.f32 %v1766_v3, %v1768_v4 }
 0x32e   : > { %v1774_v7 = vpop.f32.mrb[11].mxu1 }
 0x32f   : > { %737 = vmax.xlane.f32.xlu1 %v736_v6  ;;  %v739_v8 = vmax.f32 %v1770_v5, %v1774_v7 }
 0x333   : > { %740 = vmax.xlane.f32.xlu1 %v739_v8  ;;  %v1778_v9 = vpop.f32.mrb[12].mxu1 }
 0x334   : > { %v1782_v11 = vpop.f32.mrb[13].mxu1 }
 0x335   : > { %v1784_v13 = vpop.f32.mrb[14].mxu1  ;;  %v742_v14 = vmax.f32 %v1778_v9, %v1782_v11 }
 0x336   : > { %v1788_v15 = vpop.f32.mrb[15].mxu1 }
 0x337   : > { %743 = vmax.xlane.f32.xlu1 %v742_v14  ;;  %v745_v16 = vmax.f32 %v1784_v13, %v1788_v15 }
 0x33b   : > { %746 = vmax.xlane.f32.xlu1 %v745_v16  ;;  %v1792_v17 = vpop.f32.mrb[16].mxu1 }
 0x33c   : > { %v1794_v19 = vpop.f32.mrb[17].mxu1 }
 0x33d   : > { %v1796_v21 = vpop.f32.mrb[18].mxu1  ;;  %v748_v22 = vmax.f32 %v1792_v17, %v1794_v19 }
 0x33e   : > { %v1800_v23 = vpop.f32.mrb[19].mxu1 }
 0x33f   : > { %749 = vmax.xlane.f32.xlu1 %v748_v22  ;;  %v751_v24 = vmax.f32 %v1796_v21, %v1800_v23 }
 0x343   : > { %752 = vmax.xlane.f32.xlu1 %v751_v24  ;;  %v1804_v25 = vpop.f32.mrb[20].mxu1 }
 0x344   : > { %v1806_v26 = vpop.f32.mrb[21].mxu1 }
 0x345   : > { %v1808_v27 = vpop.f32.mrb[22].mxu1  ;;  %v754_v28 = vmax.f32 %v1804_v25, %v1806_v26 }
 0x346   : > { %v1812_v29 = vpop.f32.mrb[23].mxu1 }
 0x347   : > { %755 = vmax.xlane.f32.xlu1 %v754_v28  ;;  %v757_v30 = vmax.f32 %v1808_v27, %v1812_v29 }
 0x34b   : > { %758 = vmax.xlane.f32.xlu1 %v757_v30  ;;  %v1816_v31 = vpop.f32.mrb[24].mxu1 }
 0x34c   : > { %v1818_v32 = vpop.f32.mrb[25].mxu1 }
 0x34d   : > { %v1820_v33 = vpop.f32.mrb[26].mxu1  ;;  %v760_v34 = vmax.f32 %v1816_v31, %v1818_v32 }
 0x34e   : > { %v1824_v35 = vpop.f32.mrb[27].mxu1 }
 0x34f   : > { %761 = vmax.xlane.f32.xlu1 %v760_v34  ;;  %v763_v36 = vmax.f32 %v1820_v33, %v1824_v35 }
 0x351   : > { %764 = vmax.xlane.f32.xlu0 %v763_v36 }
 0x353   : > { %v1828_v37 = vpop.f32.mrb[28].mxu1 }
 0x354   : > { %v1830_v38 = vpop.f32.mrb[29].mxu1 }
 0x355   : > { %v1832_v39 = vpop.f32.mrb[30].mxu1  ;;  %v766_v40 = vmax.f32 %v1828_v37, %v1830_v38 }
 0x356   : > { %v1836_v41 = vpop.f32.mrb[31].mxu1 }
 0x357   : > { %767 = vmax.xlane.f32.xlu1 %v766_v40  ;;  %v769_v42 = vmax.f32 %v1832_v39, %v1836_v41 }
 0x359   : > { %770 = vmax.xlane.f32.xlu0 %v769_v42 }
 0x3ac   : > { %v726_v43 = vpop.xlane.xlu1 %725 }
 0x3ad   : > { %v772_v44 = vsub.f32 %v1742_v55, %v726_v43  ;;  %v773_v45 = vsub.f32 %v1744_v56, %v726_v43 }
 0x3af   : > { %v804_v46 = vmul.f32 1.442695, %v772_v44  ;;  %v806_v47 = vmul.f32 1.442695, %v773_v45 }
 0x3b0   : > { %v729_v48 = vpop.xlane.xlu1 %728 }
 0x3b1   : > { %1462 = vpow2.f32 %v804_v46  ;;  %v774_v49 = vsub.f32 %v1746_v57, %v729_v48  ;;  %v775_v50 = vsub.f32 %v1750_v59, %v729_v48 }
 0x3b2   : > { %1464 = vpow2.f32 %v806_v47 }
 0x3b3   : > { %v808_v51 = vmul.f32 1.442695, %v774_v49  ;;  %v810_v52 = vmul.f32 1.442695, %v775_v50 }
 0x3b4   : > { %v732_v53 = vpop.xlane.xlu0 %731 }
 0x3b5   : > { %1466 = vpow2.f32 %v808_v51  ;;  %v776_v54 = vsub.f32 %v1754_v61, %v732_v53  ;;  %v777_v58 = vsub.f32 %v1756_v62, %v732_v53 }
 0x3b6   : > { %1468 = vpow2.f32 %v810_v52  ;;  %v735_v55 = vpop.xlane.xlu1 %734 }
 0x3b7   : > { %v812_v56 = vmul.f32 1.442695, %v776_v54  ;;  %v814_v60 = vmul.f32 1.442695, %v777_v58  ;;  %v778_v0 = vsub.f32 %v1758_v63, %v735_v55  ;;  %v779_v2 = vsub.f32 %v1762_v1, %v735_v55 }
 0x3b9   : > { %1470 = vpow2.f32 %v812_v56  ;;  %v816_v57 = vmul.f32 1.442695, %v778_v0  ;;  %v818_v59 = vmul.f32 1.442695, %v779_v2 }
 0x3ba   : > { %1472 = vpow2.f32 %v814_v60 }
 0x3bb   : > { %v1463_v6 = vpop.eup %1462  ;;  %1474 = vpow2.f32 %v816_v57 }
 0x3bc   : > { %v1465_v8 = vpop.eup %1464  ;;  %1476 = vpow2.f32 %v818_v59  ;;  %v738_v10 = vpop.xlane.xlu1 %737 }
 0x3bd   : > { %v780_v61 = vsub.f32 %v1766_v3, %v738_v10  ;;  %v781_v62 = vsub.f32 %v1768_v4, %v738_v10  ;;  %v868_v12 = vadd.f32 %v1465_v8, %v1463_v6 }
 0x3bf   : > { %v1467_v14 = vpop.eup %1466  ;;  %v820_v16 = vmul.f32 1.442695, %v780_v61  ;;  %v822_v18 = vmul.f32 1.442695, %v781_v62  ;;  %869 = vadd.xlane.f32.xlu1 %v868_v12 }
 0x3c0   : > { %v1469_v63 = vpop.eup %1468  ;;  %v741_v1 = vpop.xlane.xlu1 %740  ;;  %v932_v20 = vpack.c.bf16 %v1467_v14, %v1463_v6 }
 0x3c1   : > { %1478 = vpow2.f32 %v820_v16  ;;  %v782_v22 = vsub.f32 %v1770_v5, %v741_v1  ;;  %v783_v24 = vsub.f32 %v1774_v7, %v741_v1  ;;  %v933_v28 = vpack.c.bf16 %v1469_v63, %v1465_v8 }
 0x3c2   : > { %1480 = vpow2.f32 %v822_v18  ;;  %v871_v30 = vadd.f32 %v1469_v63, %v1467_v14 }
 0x3c3   : > { %v1471_v34 = vpop.eup %1470  ;;  %v824_v3 = vmul.f32 1.442695, %v782_v22  ;;  %v826_v36 = vmul.f32 1.442695, %v783_v24  ;;  %980 = vmatprep.mubr.bf16.mxu0 %v933_v28 }
 0x3c4   : > { %v1473_v4 = vpop.eup %1472  ;;  %872 = vadd.xlane.f32.xlu0 %v871_v30  ;;  %981 = vmatmul.mubr.bf16.vlgmr.msra.gmra.mrb[4].mxu0 %v932_v20  ;;  %v744_v40 = vpop.xlane.xlu1 %743 }
 0x3c5   : > { %v1475_v42 = vpop.eup %1474  ;;  %1482 = vpow2.f32 %v824_v3  ;;  %v784_v43 = vsub.f32 %v1778_v9, %v744_v40  ;;  %v785_v44 = vsub.f32 %v1782_v11, %v744_v40  ;;  %v874_v5 = vadd.f32 %v1473_v4, %v1471_v34 }
 0x3c6   : > { %v1477_v45 = vpop.eup %1476  ;;  %1484 = vpow2.f32 %v826_v36  ;;  %v934_v7 = vpack.c.bf16 %v1475_v42, %v1471_v34 }
 0x3c7   : > { %v828_v46 = vmul.f32 1.442695, %v784_v43  ;;  %v830_v47 = vmul.f32 1.442695, %v785_v44  ;;  %875 = vadd.xlane.f32.xlu1 %v874_v5  ;;  %v877_v48 = vadd.f32 %v1477_v45, %v1475_v42  ;;  %v935_v49 = vpack.c.bf16 %v1477_v45, %v1473_v4 }
 0x3c8   : > { %v747_v50 = vpop.xlane.xlu1 %746 }
 0x3c9   : > { %1486 = vpow2.f32 %v828_v46  ;;  %v786_v51 = vsub.f32 %v1784_v13, %v747_v50  ;;  %v787_v52 = vsub.f32 %v1788_v15, %v747_v50  ;;  %878 = vadd.xlane.f32.xlu0 %v877_v48  ;;  %988 = vmatprep.mubr.bf16.mxu0 %v935_v49 }
 0x3ca   : > { %1488 = vpow2.f32 %v830_v47 }
 0x3cb   : > { %v1479_v9 = vpop.eup %1478  ;;  %v832_v11 = vmul.f32 1.442695, %v786_v51  ;;  %v834_v53 = vmul.f32 1.442695, %v787_v52 }
 0x3cc   : > { %v1481_v54 = vpop.eup %1480  ;;  %989 = vmatmul.mubr.bf16.gmra.mrb[8].mxu0 %v934_v7  ;;  %v750_v58 = vpop.xlane.xlu1 %749 }
 0x3cd   : > { %1490 = vpow2.f32 %v832_v11  ;;  %v788_v55 = vsub.f32 %v1792_v17, %v750_v58  ;;  %v789_v56 = vsub.f32 %v1794_v19, %v750_v58  ;;  %v880_v60 = vadd.f32 %v1481_v54, %v1479_v9 }
 0x3ce   : > { %1492 = vpow2.f32 %v834_v53 }
 0x3cf   : > { %v1483_v0 = vpop.eup %1482  ;;  %v836_v13 = vmul.f32 1.442695, %v788_v55  ;;  %v838_v2 = vmul.f32 1.442695, %v789_v56  ;;  %881 = vadd.xlane.f32.xlu1 %v880_v60 }
 0x3d0   : > { %v1485_v15 = vpop.eup %1484  ;;  %v753_v57 = vpop.xlane.xlu1 %752  ;;  %v936_v59 = vpack.c.bf16 %v1483_v0, %v1479_v9 }
 0x3d1   : > { %1494 = vpow2.f32 %v836_v13  ;;  %v790_v6 = vsub.f32 %v1796_v21, %v753_v57  ;;  %v791_v8 = vsub.f32 %v1800_v23, %v753_v57  ;;  %v883_v10 = vadd.f32 %v1485_v15, %v1483_v0 }
 0x3d2   : > { %1496 = vpow2.f32 %v838_v2  ;;  %v937_v61 = vpack.c.bf16 %v1485_v15, %v1481_v54 }
 0x3d3   : > { %v1487_v17 = vpop.eup %1486  ;;  %v840_v62 = vmul.f32 1.442695, %v790_v6  ;;  %v842_v19 = vmul.f32 1.442695, %v791_v8  ;;  %884 = vadd.xlane.f32.xlu0 %v883_v10 }
 0x3d4   : > { %v1489_v12 = vpop.eup %1488  ;;  %996 = vmatprep.mubr.bf16.mxu0 %v937_v61  ;;  %v756_v14 = vpop.xlane.xlu1 %755 }
 0x3d5   : > { %1498 = vpow2.f32 %v840_v62  ;;  %997 = vmatmul.mubr.bf16.gmra.mrb[12].mxu0 %v936_v59  ;;  %v792_v16 = vsub.f32 %v1804_v25, %v756_v14  ;;  %v793_v18 = vsub.f32 %v1806_v26, %v756_v14  ;;  %v886_v63 = vadd.f32 %v1489_v12, %v1487_v17 }
 0x3d6   : > { %1500 = vpow2.f32 %v842_v19 }
 0x3d7   : > { %v1491_v21 = vpop.eup %1490  ;;  %v844_v23 = vmul.f32 1.442695, %v792_v16  ;;  %v846_v1 = vmul.f32 1.442695, %v793_v18  ;;  %887 = vadd.xlane.f32.xlu1 %v886_v63 }
 0x3d8   : > { %v1493_v20 = vpop.eup %1492  ;;  %v759_v22 = vpop.xlane.xlu1 %758  ;;  %v938_v24 = vpack.c.bf16 %v1491_v21, %v1487_v17 }
 0x3d9   : > { %1502 = vpow2.f32 %v844_v23  ;;  %v794_v28 = vsub.f32 %v1808_v27, %v759_v22  ;;  %v795_v30 = vsub.f32 %v1812_v29, %v759_v22  ;;  %v889_v34 = vadd.f32 %v1493_v20, %v1491_v21  ;;  %v1460_v23 = vld [vmem:[%s1062_s11] sm:$0xff]  }
 0x3da   : > { %1504 = vpow2.f32 %v846_v1  ;;  %v939_v3 = vpack.c.bf16 %v1493_v20, %v1489_v12  ;;  %v1617_v21 = vmov 0.0   ;;  %v1461_v1 = vld [vmem:[%s1062_s11 + $0x8] sm:$0xff]  }
 0x3db   : > { %v1495_v25 = vpop.eup %1494  ;;  %v848_v36 = vmul.f32 1.442695, %v794_v28  ;;  %v850_v26 = vmul.f32 1.442695, %v795_v30  ;;  %890 = vadd.xlane.f32.xlu0 %v889_v34  ;;  %1372 = vmatprep.subr.bf16.mxu1 %v1617_v21 }
 0x3dc   : > { %v1497_v4 = vpop.eup %1496  ;;  %1004 = vmatprep.mubr.bf16.mxu0 %v939_v3  ;;  %v762_v40 = vpop.xlane.xlu1 %761  ;;  %1388 = vmatprep.mubr.msk.bf16.mxu1 %vm1618_vm5, %v1617_v21 }
 0x3dd   : > { %1506 = vpow2.f32 %v848_v36  ;;  %1005 = vmatmul.mubr.bf16.gmra.mrb[16].mxu0 %v938_v24  ;;  %v796_v42 = vsub.f32 %v1816_v31, %v762_v40  ;;  %v797_v43 = vsub.f32 %v1818_v32, %v762_v40  ;;  %v892_v44 = vadd.f32 %v1497_v4, %v1495_v25 }
 0x3de   : > { %1508 = vpow2.f32 %v850_v26  ;;  %v765_v27 = vpop.xlane.xlu0 %764 }
 0x3df   : > { %v1499_v29 = vpop.eup %1498  ;;  %v852_v5 = vmul.f32 1.442695, %v796_v42  ;;  %v854_v45 = vmul.f32 1.442695, %v797_v43  ;;  %893 = vadd.xlane.f32.xlu1 %v892_v44  ;;  %v798_v7 = vsub.f32 %v1820_v33, %v765_v27  ;;  %v799_v46 = vsub.f32 %v1824_v35, %v765_v27 }
 0x3e0   : > { %v1501_v47 = vpop.eup %1500  ;;  %v940_v48 = vpack.c.bf16 %v1499_v29, %v1495_v25 }
 0x3e1   : > { %1510 = vpow2.f32 %v852_v5  ;;  %v856_v49 = vmul.f32 1.442695, %v798_v7  ;;  %v858_v50 = vmul.f32 1.442695, %v799_v46  ;;  %v895_v51 = vadd.f32 %v1501_v47, %v1499_v29 }
 0x3e2   : > { %1512 = vpow2.f32 %v854_v45  ;;  %v941_v31 = vpack.c.bf16 %v1501_v47, %v1497_v4 }
 0x3e3   : > { %v1503_v32 = vpop.eup %1502  ;;  %1514 = vpow2.f32 %v856_v49  ;;  %896 = vadd.xlane.f32.xlu0 %v895_v51 }
 0x3e4   : > { %v1505_v52 = vpop.eup %1504  ;;  %1516 = vpow2.f32 %v858_v50  ;;  %1012 = vmatprep.mubr.bf16.mxu0 %v941_v31  ;;  %v768_v9 = vpop.xlane.xlu1 %767 }
 0x3e5   : > { %1013 = vmatmul.mubr.bf16.gmra.mrb[20].mxu0 %v940_v48  ;;  %v800_v33 = vsub.f32 %v1828_v37, %v768_v9  ;;  %v801_v35 = vsub.f32 %v1830_v38, %v768_v9  ;;  %v898_v11 = vadd.f32 %v1505_v52, %v1503_v32 }
 0x3e6   : > { %v771_v53 = vpop.xlane.xlu0 %770 }
 0x3e7   : > { %v1507_v54 = vpop.eup %1506  ;;  %v860_v58 = vmul.f32 1.442695, %v800_v33  ;;  %v862_v55 = vmul.f32 1.442695, %v801_v35  ;;  %899 = vadd.xlane.f32.xlu1 %v898_v11  ;;  %v802_v56 = vsub.f32 %v1832_v39, %v771_v53  ;;  %v803_v60 = vsub.f32 %v1836_v41, %v771_v53 }
 0x3e8   : > { %v1509_v0 = vpop.eup %1508  ;;  %v942_v13 = vpack.c.bf16 %v1507_v54, %v1503_v32 }
 0x3e9   : > { %1518 = vpow2.f32 %v860_v58  ;;  %v864_v2 = vmul.f32 1.442695, %v802_v56  ;;  %v866_v15 = vmul.f32 1.442695, %v803_v60  ;;  %v901_v57 = vadd.f32 %v1509_v0, %v1507_v54 }
 0x3ea   : > { %1520 = vpow2.f32 %v862_v55  ;;  %v943_v37 = vpack.c.bf16 %v1509_v0, %v1505_v52 }
 0x3eb   : > { %v1511_v59 = vpop.eup %1510  ;;  %1522 = vpow2.f32 %v864_v2  ;;  %902 = vadd.xlane.f32.xlu0 %v901_v57 }
 0x3ec   : > { %v1513_v38 = vpop.eup %1512  ;;  %1524 = vpow2.f32 %v866_v15  ;;  %1020 = vmatprep.mubr.bf16.mxu0 %v943_v37 }
 0x3ed   : > { %v1515_v6 = vpop.eup %1514  ;;  %1021 = vmatmul.mubr.bf16.gmra.mrb[24].mxu0 %v942_v13  ;;  %v904_v39 = vadd.f32 %v1513_v38, %v1511_v59 }
 0x3ee   : > { %v1517_v8 = vpop.eup %1516  ;;  %v944_v41 = vpack.c.bf16 %v1515_v6, %v1511_v59 }
 0x3ef   : > { %905 = vadd.xlane.f32.xlu1 %v904_v39  ;;  %v945_v10 = vpack.c.bf16 %v1517_v8, %v1513_v38  ;;  %v907_v61 = vadd.f32 %v1517_v8, %v1515_v6 }
 0x3f1   : > { %1028 = vmatprep.mubr.bf16.mxu0 %v945_v10  ;;  %908 = vadd.xlane.f32.xlu0 %v907_v61 }
 0x3f3   : > { %v1519_v17 = vpop.eup %1518 }
 0x3f4   : > { %v1521_v62 = vpop.eup %1520 }
 0x3f5   : > { %v1523_v19 = vpop.eup %1522  ;;  %1029 = vmatmul.mubr.bf16.gmra.mrb[28].mxu0 %v944_v41  ;;  %v910_v12 = vadd.f32 %v1521_v62, %v1519_v17 }
 0x3f6   : > { %v1525_v14 = vpop.eup %1524  ;;  %v946_v16 = vpack.c.bf16 %v1523_v19, %v1519_v17 }
 0x3f7   : > { %911 = vadd.xlane.f32.xlu1 %v910_v12  ;;  %v947_v18 = vpack.c.bf16 %v1525_v14, %v1521_v62  ;;  %v913_v63 = vadd.f32 %v1525_v14, %v1523_v19 }
 0x3f9   : > { %1036 = vmatprep.mubr.bf16.mxu0 %v947_v18  ;;  %914 = vadd.xlane.f32.xlu0 %v913_v63 }
 0x3fd   : > { %1037 = vmatmul.mubr.bf16.gmra.mrb[32].mxu0 %v946_v16 }
 0x424   : > { %1087 = vxpose.xlu1.c.b16.start [1/2] (short) (narrow) %v1460_v23, 16 }
 0x428   : > { %1088 = vxpose.xlu1.c.b16.end [2/2] (short) (narrow) %v1461_v1, 16 }
 0x44c   : > { %v870_v20 = vpop.xlane.xlu1 %869 }
 0x44d   : > { %1526 = vrcp.f32 %v870_v20 }
 0x451   : > { %v873_v22 = vpop.xlane.xlu0 %872 }
 0x452   : > { %1528 = vrcp.f32 %v873_v22 }
 0x454   : > { %v876_v24 = vpop.xlane.xlu1 %875 }
 0x455   : > { %1530 = vrcp.f32 %v876_v24 }
 0x456   : > { %v879_v28 = vpop.xlane.xlu0 %878 }
 0x457   : > { %1532 = vrcp.f32 %v879_v28  ;;  %v1527_v34 = vpop.eup %1526 }
 0x45c   : > { %v1529_v25 = vpop.eup %1528  ;;  %v882_v42 = vpop.xlane.xlu1 %881 }
 0x45d   : > { %1534 = vrcp.f32 %v882_v42 }
 0x45f   : > { %v1531_v5 = vpop.eup %1530 }
 0x460   : > { %v885_v44 = vpop.xlane.xlu0 %884 }
 0x461   : > { %1536 = vrcp.f32 %v885_v44  ;;  %v1533_v7 = vpop.eup %1532 }
 0x464   : > { %v888_v50 = vpop.xlane.xlu1 %887 }
 0x465   : > { %1538 = vrcp.f32 %v888_v50 }
 0x467   : > { %v1535_v9 = vpop.eup %1534 }
 0x468   : > { %v891_v31 = vpop.xlane.xlu0 %890 }
 0x469   : > { %1540 = vrcp.f32 %v891_v31 }
 0x46b   : > { %v1537_v35 = vpop.eup %1536 }
 0x46c   : > { %v894_v55 = vpop.xlane.xlu1 %893 }
 0x46d   : > { %1542 = vrcp.f32 %v894_v55 }
 0x46f   : > { %v1539_v2 = vpop.eup %1538 }
 0x470   : > { %v897_v56 = vpop.xlane.xlu0 %896 }
 0x471   : > { %1544 = vrcp.f32 %v897_v56 }
 0x473   : > { %v1541_v57 = vpop.eup %1540 }
 0x474   : > { %v900_v39 = vpop.xlane.xlu1 %899 }
 0x475   : > { %1546 = vrcp.f32 %v900_v39 }
 0x477   : > { %v1543_v17 = vpop.eup %1542 }
 0x478   : > { %v903_v8 = vpop.xlane.xlu0 %902 }
 0x479   : > { %1548 = vrcp.f32 %v903_v8 }
 0x47b   : > { %v1545_v19 = vpop.eup %1544 }
 0x47c   : > { %v906_v63 = vpop.xlane.xlu1 %905 }
 0x47d   : > { %1550 = vrcp.f32 %v906_v63 }
 0x47e   : > { %v909_v23 = vpop.xlane.xlu0 %908 }
 0x47f   : > { %1552 = vrcp.f32 %v909_v23  ;;  %v1547_v24 = vpop.eup %1546 }
 0x497   : > { %v982_v30 = vpop.f32.mrb[4].mxu0 }
 0x498   : > { %v984_v3 = vpop.f32.mrb[5].mxu0  ;;  %v1045_v26 = vmul.f32 %v1527_v34, %v982_v30  ;;  %v1549_v30 = vpop.eup %1548 }
 0x499   : > { %v985_v36 = vpop.f32.mrb[6].mxu0  ;;  %v1551_v44 = vpop.eup %1550 }
 0x49a   : > { %v1046_v4 = vmul.f32 %v1529_v25, %v985_v36  ;;  %v987_v40 = vpop.f32.mrb[7].mxu0 }
 0x49c   : > { %v1067_v43 = vpack.c.bf16 %v1046_v4, %v1045_v26  ;;  %v912_v26 = vpop.xlane.xlu1 %911  ;;  %v915_v4 = vpop.xlane.xlu0 %914 }
 0x49d   : > { %1554 = vrcp.f32 %v912_v26 }
 0x49e   : > { %v1107_v27 = vsel %vm586_vm4, %v1067_v43, 0  ;;  %1556 = vrcp.f32 %v915_v4 }
 0x49f   : > { %v990_v29 = vpop.f32.mrb[8].mxu0  ;;  %1373 = vmatpush3.bf16.xpose.msra.mxu1 %v1107_v27 }
 0x4a0   : > { %v992_v45 = vpop.f32.mrb[9].mxu0  ;;  %1374 = vmatprep.subr.bf16.mxu1 %v1617_v21  ;;  %v1047_v47 = vmul.f32 %v1531_v5, %v990_v29  ;;  %v1553_v29 = vpop.eup %1552 }
 0x4a1   : > { %v993_v46 = vpop.f32.mrb[10].mxu0 }
 0x4a2   : > { %v1048_v48 = vmul.f32 %v1533_v7, %v993_v46  ;;  %v995_v49 = vpop.f32.mrb[11].mxu0 }
 0x4a4   : > { %v1068_v51 = vpack.c.bf16 %v1048_v48, %v1047_v47 }
 0x4a6   : > { %v1110_v32 = vsel %vm586_vm4, %v1068_v51, 0 }
 0x4a7   : > { %1375 = vmatpush3.bf16.xpose.msra.mxu1 %v1110_v32  ;;  %v1555_v50 = vpop.eup %1554 }
 0x4a8   : > { %v998_v52 = vpop.f32.mrb[12].mxu0  ;;  %1376 = vmatprep.subr.bf16.mxu1 %v1617_v21  ;;  %v1557_v31 = vpop.eup %1556 }
 0x4a9   : > { %v1000_v33 = vpop.f32.mrb[13].mxu0  ;;  %v1049_v53 = vmul.f32 %v1535_v9, %v998_v52 }
 0x4aa   : > { %v1001_v11 = vpop.f32.mrb[14].mxu0 }
 0x4ab   : > { %v1050_v54 = vmul.f32 %v1537_v35, %v1001_v11  ;;  %v1003_v58 = vpop.f32.mrb[15].mxu0 }
 0x4ad   : > { %v1069_v60 = vpack.c.bf16 %v1050_v54, %v1049_v53  ;;  %v1095_v53 = vpop.trf.xlu1 }
 0x4af   : > { %v1113_v0 = vsel %vm586_vm4, %v1069_v60, 0  ;;  %v1619_v60 = vmov (!%p1341_p9), 0  }
 0x4b0   : > { %v1006_v13 = vpop.f32.mrb[16].mxu0  ;;  %1377 = vmatpush3.bf16.xpose.msra.mxu1 %v1113_v0  ;;  %1558 = vset.pattern.permute.xlu0 (!%p1341_p9), %v1619_v60 }
 0x4b1   : > { %v1008_v15 = vpop.f32.mrb[17].mxu0  ;;  %1378 = vmatprep.subr.bf16.mxu1 %v1617_v21  ;;  %v1051_v59 = vmul.f32 %v1539_v2, %v1006_v13 }
 0x4b2   : > { %v1009_v37 = vpop.f32.mrb[18].mxu0 }
 0x4b3   : > { %v1052_v38 = vmul.f32 %v1541_v57, %v1009_v37  ;;  %v1011_v6 = vpop.f32.mrb[19].mxu0 }
 0x4b5   : > { %v1070_v41 = vpack.c.bf16 %v1052_v38, %v1051_v59 }
 0x4b7   : > { %v1116_v10 = vsel %vm586_vm4, %v1070_v41, 0 }
 0x4b8   : > { %v1014_v61 = vpop.f32.mrb[20].mxu0  ;;  %1379 = vmatpush3.bf16.xpose.msra.mxu1 %v1116_v10 }
 0x4b9   : > { %v1016_v62 = vpop.f32.mrb[21].mxu0  ;;  %1380 = vmatprep.subr.bf16.mxu1 %v1617_v21  ;;  %v1053_v14 = vmul.f32 %v1543_v17, %v1014_v61 }
 0x4ba   : > { %v1017_v12 = vpop.f32.mrb[22].mxu0 }
 0x4bb   : > { %v1054_v16 = vmul.f32 %v1545_v19, %v1017_v12  ;;  %v1019_v18 = vpop.f32.mrb[23].mxu0 }
 0x4bd   : > { %v1071_v1 = vpack.c.bf16 %v1054_v16, %v1053_v14 }
 0x4bf   : > { %v1119_v20 = vsel %vm586_vm4, %v1071_v1, 0 }
 0x4c0   : > { %v1022_v22 = vpop.f32.mrb[24].mxu0  ;;  %1381 = vmatpush3.bf16.xpose.msra.mxu1 %v1119_v20 }
 0x4c1   : > { %v1024_v28 = vpop.f32.mrb[25].mxu0  ;;  %1382 = vmatprep.subr.bf16.mxu1 %v1617_v21  ;;  %v1055_v3 = vmul.f32 %v1547_v24, %v1022_v22 }
 0x4c2   : > { %v1025_v34 = vpop.f32.mrb[26].mxu0 }
 0x4c3   : > { %v1056_v25 = vmul.f32 %v1549_v30, %v1025_v34  ;;  %v1027_v36 = vpop.f32.mrb[27].mxu0 }
 0x4c5   : > { %v1072_v40 = vpack.c.bf16 %v1056_v25, %v1055_v3 }
 0x4c7   : > { %v1122_v42 = vsel %vm586_vm4, %v1072_v40, 0 }
 0x4c8   : > { %v1030_v43 = vpop.f32.mrb[28].mxu0  ;;  %1383 = vmatpush3.bf16.xpose.msra.mxu1 %v1122_v42 }
 0x4c9   : > { %v1032_v27 = vpop.f32.mrb[29].mxu0  ;;  %1384 = vmatprep.subr.bf16.mxu1 %v1617_v21  ;;  %v1057_v45 = vmul.f32 %v1551_v44, %v1030_v43 }
 0x4ca   : > { %v1033_v5 = vpop.f32.mrb[30].mxu0 }
 0x4cb   : > { %v1058_v7 = vmul.f32 %v1553_v29, %v1033_v5  ;;  %v1035_v46 = vpop.f32.mrb[31].mxu0 }
 0x4cd   : > { %v1073_v47 = vpack.c.bf16 %v1058_v7, %v1057_v45 }
 0x4cf   : > { %v1125_v48 = vsel %vm586_vm4, %v1073_v47, 0 }
 0x4d0   : > { %v1038_v49 = vpop.f32.mrb[32].mxu0  ;;  %1385 = vmatpush3.bf16.xpose.msra.mxu1 %v1125_v48 }
 0x4d1   : > { %v1040_v51 = vpop.f32.mrb[33].mxu0  ;;  %1386 = vmatprep.subr.bf16.mxu1 %v1617_v21  ;;  %v1059_v52 = vmul.f32 %v1555_v50, %v1038_v49  ;;  %v1174_v21 = vld [vmem:[%s1929_s5] sm:$0xf] (!%p1341_p9) }
 0x4d2   : > { %v1041_v32 = vpop.f32.mrb[34].mxu0  ;;  %1177 = vperm.xlu0 (!%p1341_p9), %1558, %v1174_v21  }
 0x4d3   : > { %v1060_v9 = vmul.f32 %v1557_v31, %v1041_v32  ;;  %v1043_v33 = vpop.f32.mrb[35].mxu0 }
 0x4d5   : > { %v1074_v35 = vpack.c.bf16 %v1060_v9, %v1059_v52 }
 0x4d7   : > { %v1128_v11 = vsel %vm586_vm4, %v1074_v35, 0 }
 0x4d8   : > { %1387 = vmatpush3.bf16.xpose.msra.mxu1 %v1128_v11 }
 0x4df   : > { %1389 = vmatmul.mubr.msk.bf16.vlgmr.msra.gmra.mrb[32].mxu1 %vm586_vm4, %v1095_v53 }
 0x551   : > { %v1178_v0 = vpop.permute.xlu0 (!%p1341_p9), %1177 }
 0x5af   : > { %1173 = sbr.rel (%p1341_p9) target bundleno = 1462 (0x5b6), region = 52 }
 0x5b2   : > { %v1164_v54 = vpop.f32.mrb[32].mxu1 }
 0x5b3   : > { %v1390_v58 = vpop.f32.mrb[33].mxu1  ;;  %v1180_v13 = vadd.f32 (!%p1341_p9), %v1178_v0, %v1164_v54 }
 0x5b4   : > { %v1167_v55 = vpop.f32.mrb[34].mxu1 }
 0x5b5   : > { %v1391_v56 = vpop.f32.mrb[35].mxu1  ;;  %1181 = vst [vmem:[%s1711_s17] sm:$0xf] (!%p1341_p9), %v1180_v13 }
 0x5b6 PF: > { %p1342_p10 = scmp.le.s32.totalorder %s1589_s21, 0 }
 0x5b8   : > { %1185 = sbr.rel (%p1342_p10) target bundleno = 1472 (0x5c0), region = 56 }
 0x5bc   : > { %v1186_v2 = vld [vmem:[%s1711_s17] sm:$0xf] (!%p1342_p10) }
 0x5bd   : > { %v1187_v15 = vadd.f32 (!%p1342_p10), %v1186_v2, %v1164_v54 }
 0x5bf   : > { %1188 = vst [vmem:[%s1711_s17] sm:$0xf] %v1187_v15 }
 0x5c0 PF: > { %s16_s27 = sadd.s32 1, %s1613_s27   ;;  %s1931_s21 = smov %s1601_s24 }
 0x5c1   : > { %p13_p11 = scmp.ge.s32.totalorder %s16_s27, 18   ;;  %s1932_s22 = smov %s1605_s25 }
 0x5c2   : > { %s1933_s23 = smov %s1609_s26  ;;  %s1934_s24 = smov %s1938_s28 }
 0x5c3   : > { %s1935_s25 = smov %s1942_s29  ;;  %s1936_s26 = smov %s1946_s30 }
 0x5c4   :  { %15 = sbr.rel (!%p13_p11) target bundleno = 4 (0x4), region = 95 }

</bundles_post_ra>
